<compile_context>
chip_gen: v6e
topology: v6e:2x2x1
jax: 0.10.0
libtpu: 0.0.40
codegen_flags: <defaults>
</compile_context>

<pallas_src>
import jax
import jax.numpy as jnp
from jax import lax
from jax.experimental import pallas as pl
from jax.experimental.pallas import tpu as pltpu


def _self_attention_kernel(x_full_ref, x_q_ref, wq_ref, wk_ref, wv_ref,
                           attn_ref, v_ref, k_scratch):
    qi = pl.program_id(1)

    # Compute k and v once per batch element; they are reused across all query tiles.
    @pl.when(qi == 0)
    def _():
        x_full = x_full_ref[0]                                    # (S, d_in)
        k_scratch[...] = jnp.dot(x_full, wk_ref[...],
                                 preferred_element_type=jnp.float32)   # (S, d_out)
        v = jnp.dot(x_full, wv_ref[...],
                    preferred_element_type=jnp.float32)                # (S, d_out)
        v_ref[0] = v.astype(v_ref.dtype)

    # q for the current query tile. W_q already carries the 1/sqrt(d_out) scale.
    x_q = x_q_ref[0]                                              # (tq, d_in)
    q = jnp.dot(x_q, wq_ref[...], preferred_element_type=jnp.float32)  # (tq, d_out)

    # scores = q @ k^T without materializing a transpose of k.
    s = lax.dot_general(q, k_scratch[...],
                        dimension_numbers=(((1,), (1,)), ((), ())),
                        preferred_element_type=jnp.float32)       # (tq, S)

    # Numerically stable softmax over the last axis.
    s = s - jnp.max(s, axis=-1, keepdims=True)
    p = jnp.exp(s)
    denom = jnp.sum(p, axis=-1, keepdims=True)
    r = pl.reciprocal(denom, approx=True)         # EUP slot
    r = r * (2.0 - denom * r)                     # one Newton step -> f32-exact probs
    attn_ref[0] = (p * r).astype(attn_ref.dtype)


def _pick_q_tile(S, target=256):
    """Largest multiple-of-8 divisor of S that is <= target; full S if none/small."""
    if S <= target:
        return S
    for t in range(min(target, S), 7, -8):
        if S % t == 0 and t % 8 == 0:
            return t
    return S


def self_attention(x, w_q, w_k, w_v, *, q_tile=256):
    """x: (B, S, d_in); W_*: (d_in, d_out) (same layout as the PyTorch module).

    Returns (attn_weights, v) with shapes (B, S, S) and (B, S, d_out)."""
    B, S, d_in = x.shape
    d_out = w_q.shape[-1]
    assert w_q.shape == (d_in, d_out)
    assert w_k.shape == (d_in, d_out)
    assert w_v.shape == (d_in, d_out)

    tq = _pick_q_tile(S, q_tile)
    n_q = S // tq

    # Fold the 1/sqrt(d_out) scale into W_q on the host.
    scale = 1.0 / float(d_out) ** 0.5
    wq_scaled = (w_q * scale).astype(w_q.dtype)

    out_dtype = x.dtype

    # Explicit VMEM budget derived from the tiles (double-buffered worst case),
    # floored for small shapes and capped below v7x's 64 MiB physical VMEM.
    itemsize = 4
    vmem_need = itemsize * (
        2 * (S * d_in)            # full-x view (per batch)
        + 2 * (tq * d_in)         # query-tile view
        + 2 * 3 * (d_in * d_out)  # weights (assume double-buffered worst case)
        + 2 * (tq * S)            # attn output slab
        + 2 * (S * d_out)         # v output
        + (S * d_out)             # k scratch
    )
    vmem_limit = int(min(max(2 * vmem_need, 16 * 1024 * 1024), 48 * 1024 * 1024))

    cost = pl.CostEstimate(
        flops=2 * B * S * d_in * d_out * 3 + 2 * B * S * S * d_out,
        transcendentals=B * S * S,
        bytes_accessed=itemsize * (B * S * d_in + 3 * d_in * d_out
                                   + B * S * S + B * S * d_out),
    )

    attn, v = pl.pallas_call(
        _self_attention_kernel,
        out_shape=(
            jax.ShapeDtypeStruct((B, S, S), out_dtype),       # softmax weights
            jax.ShapeDtypeStruct((B, S, d_out), out_dtype),   # v
        ),
        grid_spec=pltpu.PrefetchScalarGridSpec(
            num_scalar_prefetch=0,
            grid=(B, n_q),
            in_specs=[
                # Full-sequence view of x for k / v (re-DMA'd only on batch change).
                pl.BlockSpec((1, S, d_in), lambda b, qi: (b, 0, 0)),
                # Query-tile view of x.
                pl.BlockSpec((1, tq, d_in), lambda b, qi: (b, qi, 0)),
                # Block-invariant weights (tiny; DMA'd once).
                pl.BlockSpec((d_in, d_out), lambda b, qi: (0, 0)),
                pl.BlockSpec((d_in, d_out), lambda b, qi: (0, 0)),
                pl.BlockSpec((d_in, d_out), lambda b, qi: (0, 0)),
            ],
            out_specs=(
                # Lane-dense (tq, S) slab of the softmax weights per grid step.
                pl.BlockSpec((1, tq, S), lambda b, qi: (b, qi, 0)),
                # v: block-invariant along the query-tile axis (written at qi == 0,
                # resident in VMEM, flushed at batch change).
                pl.BlockSpec((1, S, d_out), lambda b, qi: (b, 0, 0)),
            ),
            scratch_shapes=[pltpu.VMEM((S, d_out), jnp.float32)],  # k, reused across q tiles
        ),
        compiler_params=pltpu.CompilerParams(
            # Batch axis is megacore-parallel; q-tile axis carries resident state
            # (k scratch, v output) so it must be "arbitrary".
            dimension_semantics=("parallel", "arbitrary"),
            vmem_limit_bytes=vmem_limit,
        ),
        cost_estimate=cost,
    )(x, x, wq_scaled, w_k, w_v)

    return attn, v


def self_attention_ref(x, w_q, w_k, w_v):
    d_out = w_q.shape[-1]
    q = x @ w_q
    k = x @ w_k
    v = x @ w_v
    s = jnp.einsum("bqd,bkd->bqk", q, k) / float(d_out) ** 0.5
    return jax.nn.softmax(s, axis=-1), v


if __name__ == "__main__":
    key = jax.random.PRNGKey(0)
    B, S, d_in, d_out = 2, 8, 32, 16

    kx, kq, kk, kv = jax.random.split(key, 4)
    x = jax.random.normal(kx, (B, S, d_in), dtype=jnp.float32)
    # Matches the module init: torch.rand -> uniform [0, 1), shape (d_in, d_out).
    w_q = jax.random.uniform(kq, (d_in, d_out), jnp.float32)
    w_k = jax.random.uniform(kk, (d_in, d_out), jnp.float32)
    w_v = jax.random.uniform(kv, (d_in, d_out), jnp.float32)

    attn, v = self_attention(x, w_q, w_k, w_v)
    attn, v = jax.block_until_ready((attn, v))

    attn_ref, v_ref = self_attention_ref(x, w_q, w_k, w_v)

    assert attn.shape == (B, S, S)
    assert v.shape == (B, S, d_out)
    assert jnp.allclose(v, v_ref, atol=1e-4, rtol=1e-4)
    assert jnp.allclose(attn, attn_ref, atol=5e-4, rtol=5e-4)
    assert jnp.allclose(jnp.sum(attn, axis=-1), 1.0, atol=1e-4)

    print("KERNEL_OK")
</pallas_src>

<mosaic_0001>
module attributes {stable_mosaic.version = 11 : i64} {
  func.func @_self_attention_kernel(%arg0: i32, %arg1: i32, %arg2: memref<1x8x32xf32, #tpu.memory_space<vmem>>, %arg3: memref<1x8x32xf32, #tpu.memory_space<vmem>>, %arg4: memref<32x16xf32, #tpu.memory_space<vmem>>, %arg5: memref<32x16xf32, #tpu.memory_space<vmem>>, %arg6: memref<32x16xf32, #tpu.memory_space<vmem>>, %arg7: memref<1x8x8xf32, #tpu.memory_space<vmem>>, %arg8: memref<1x8x16xf32, #tpu.memory_space<vmem>>, %arg9: memref<8x16xf32, #tpu.memory_space<vmem>>) attributes {dimension_semantics = [#tpu.dimension_semantics<parallel>, #tpu.dimension_semantics<arbitrary>], iteration_bounds = array<i64: 2, 1>, scalar_prefetch = 0 : i64, scratch_operands = 1 : i64, tpu.core_type = #tpu.core_type<tc>, window_params = [{transform_indices = @transform_0, window_bounds = array<i64: 1, 8, 32>}, {transform_indices = @transform_1, window_bounds = array<i64: 1, 8, 32>}, {pipeline_mode = #tpu.pipeline_mode<synchronous>, transform_indices = @transform_2, window_bounds = array<i64: 32, 16>}, {pipeline_mode = #tpu.pipeline_mode<synchronous>, transform_indices = @transform_3, window_bounds = array<i64: 32, 16>}, {pipeline_mode = #tpu.pipeline_mode<synchronous>, transform_indices = @transform_4, window_bounds = array<i64: 32, 16>}, {transform_indices = @transform_5, window_bounds = array<i64: 1, 8, 8>}, {transform_indices = @transform_6, window_bounds = array<i64: 1, 8, 16>}]} {
    %c0_i32 = arith.constant 0 : i32
    %0 = arith.cmpi eq, %arg1, %c0_i32 : i32
    %1 = arith.extui %0 : i1 to i32
    %c0_i32_0 = arith.constant 0 : i32
    %2 = arith.cmpi ne, %1, %c0_i32_0 : i32
    scf.if %2 {
      %c0_14 = arith.constant 0 : index
      %c0_15 = arith.constant 0 : index
      %c0_16 = arith.constant 0 : index
      %26 = vector.load %arg2[%c0_14, %c0_15, %c0_16] : memref<1x8x32xf32, #tpu.memory_space<vmem>>, vector<1x8x32xf32>
      %27 = vector.shape_cast %26 : vector<1x8x32xf32> to vector<8x32xf32>
      %c0_17 = arith.constant 0 : index
      %c0_18 = arith.constant 0 : index
      %28 = vector.load %arg5[%c0_17, %c0_18] : memref<32x16xf32, #tpu.memory_space<vmem>>, vector<32x16xf32>
      %cst_19 = arith.constant dense<0.000000e+00> : vector<8x16xf32>
      %29 = tpu.matmul %27, %28, %cst_19 {dimension_numbers = #tpu.dot_dimension_numbers<[1], [0], [0], [1], [0, 0, 1, 1], [], []>} : vector<8x32xf32>, vector<32x16xf32>, vector<8x16xf32> -> vector<8x16xf32>
      %c0_20 = arith.constant 0 : index
      %c0_21 = arith.constant 0 : index
      %30 = vector.load %arg9[%c0_20, %c0_21] : memref<8x16xf32, #tpu.memory_space<vmem>>, vector<8x16xf32>
      tpu.vector_store %arg9[%c0_20, %c0_21], %29 {strides = array<i32>} : memref<8x16xf32, #tpu.memory_space<vmem>>, vector<8x16xf32>,
      %c0_22 = arith.constant 0 : index
      %c0_23 = arith.constant 0 : index
      %31 = vector.load %arg6[%c0_22, %c0_23] : memref<32x16xf32, #tpu.memory_space<vmem>>, vector<32x16xf32>
      %cst_24 = arith.constant dense<0.000000e+00> : vector<8x16xf32>
      %32 = tpu.matmul %27, %31, %cst_24 {dimension_numbers = #tpu.dot_dimension_numbers<[1], [0], [0], [1], [0, 0, 1, 1], [], []>} : vector<8x32xf32>, vector<32x16xf32>, vector<8x16xf32> -> vector<8x16xf32>
      %c0_25 = arith.constant 0 : index
      %c0_26 = arith.constant 0 : index
      %c0_27 = arith.constant 0 : index
      %33 = vector.load %arg8[%c0_25, %c0_26, %c0_27] : memref<1x8x16xf32, #tpu.memory_space<vmem>>, vector<1x8x16xf32>
      %34 = vector.shape_cast %33 : vector<1x8x16xf32> to vector<8x16xf32>
      %35 = vector.shape_cast %32 : vector<8x16xf32> to vector<1x8x16xf32>
      tpu.vector_store %arg8[%c0_25, %c0_26, %c0_27], %35 {strides = array<i32>} : memref<1x8x16xf32, #tpu.memory_space<vmem>>, vector<1x8x16xf32>,
    } else {
    }
    %c0 = arith.constant 0 : index
    %c0_1 = arith.constant 0 : index
    %c0_2 = arith.constant 0 : index
    %3 = vector.load %arg3[%c0, %c0_1, %c0_2] : memref<1x8x32xf32, #tpu.memory_space<vmem>>, vector<1x8x32xf32>
    %4 = vector.shape_cast %3 : vector<1x8x32xf32> to vector<8x32xf32>
    %c0_3 = arith.constant 0 : index
    %c0_4 = arith.constant 0 : index
    %5 = vector.load %arg4[%c0_3, %c0_4] : memref<32x16xf32, #tpu.memory_space<vmem>>, vector<32x16xf32>
    %cst = arith.constant dense<0.000000e+00> : vector<8x16xf32>
    %6 = tpu.matmul %4, %5, %cst {dimension_numbers = #tpu.dot_dimension_numbers<[1], [0], [0], [1], [0, 0, 1, 1], [], []>} : vector<8x32xf32>, vector<32x16xf32>, vector<8x16xf32> -> vector<8x16xf32>
    %c0_5 = arith.constant 0 : index
    %c0_6 = arith.constant 0 : index
    %7 = vector.load %arg9[%c0_5, %c0_6] : memref<8x16xf32, #tpu.memory_space<vmem>>, vector<8x16xf32>
    %cst_7 = arith.constant dense<0.000000e+00> : vector<8x8xf32>
    %8 = tpu.matmul %6, %7, %cst_7 {dimension_numbers = #tpu.dot_dimension_numbers<[1], [1], [0], [0], [0, 0, 1, 0], [], []>} : vector<8x16xf32>, vector<8x16xf32>, vector<8x8xf32> -> vector<8x8xf32>
    %cst_8 = arith.constant dense<0xFF800000> : vector<8xf32>
    %9 = vector.multi_reduction <maximumf>, %8, %cst_8 [1] : vector<8x8xf32> to vector<8xf32>
    %10 = vector.shape_cast %9 : vector<8xf32> to vector<8x1xf32>
    %11 = vector.broadcast %10 : vector<8x1xf32> to vector<8x8xf32>
    %12 = arith.subf %8, %11 : vector<8x8xf32>
    %13 = math.exp %12 : vector<8x8xf32>
    %cst_9 = arith.constant dense<0.000000e+00> : vector<8xf32>
    %14 = vector.multi_reduction <add>, %13, %cst_9 [1] : vector<8x8xf32> to vector<8xf32>
    %15 = vector.shape_cast %14 : vector<8xf32> to vector<8x1xf32>
    %16 = tpu.reciprocal %15 {approx = true} : vector<8x1xf32> -> vector<8x1xf32>
    %17 = arith.mulf %15, %16 : vector<8x1xf32>
    %cst_10 = arith.constant 2.000000e+00 : f32
    %18 = vector.broadcast %cst_10 : f32 to vector<8x1xf32>
    %19 = arith.subf %18, %17 : vector<8x1xf32>
    %20 = arith.mulf %16, %19 : vector<8x1xf32>
    %21 = vector.broadcast %20 : vector<8x1xf32> to vector<8x8xf32>
    %22 = arith.mulf %13, %21 : vector<8x8xf32>
    %c0_11 = arith.constant 0 : index
    %c0_12 = arith.constant 0 : index
    %c0_13 = arith.constant 0 : index
    %23 = vector.load %arg7[%c0_11, %c0_12, %c0_13] : memref<1x8x8xf32, #tpu.memory_space<vmem>>, vector<1x8x8xf32>
    %24 = vector.shape_cast %23 : vector<1x8x8xf32> to vector<8x8xf32>
    %25 = vector.shape_cast %22 : vector<8x8xf32> to vector<1x8x8xf32>
    tpu.vector_store %arg7[%c0_11, %c0_12, %c0_13], %25 {strides = array<i32>} : memref<1x8x8xf32, #tpu.memory_space<vmem>>, vector<1x8x8xf32>,
    return
  }
  func.func @transform_0(%arg0: i32, %arg1: i32) -> (i32, i32, i32) {
    %c0_i32 = arith.constant 0 : i32
    %c0_i32_0 = arith.constant 0 : i32
    %c0_i32_1 = arith.constant 0 : i32
    return %arg0, %c0_i32, %c0_i32_0 : i32, i32, i32
  }
  func.func @transform_1(%arg0: i32, %arg1: i32) -> (i32, i32, i32) {
    %c0_i32 = arith.constant 0 : i32
    %c0_i32_0 = arith.constant 0 : i32
    return %arg0, %arg1, %c0_i32 : i32, i32, i32
  }
  func.func @transform_2(%arg0: i32, %arg1: i32) -> (i32, i32) {
    %c0_i32 = arith.constant 0 : i32
    %c0_i32_0 = arith.constant 0 : i32
    %c0_i32_1 = arith.constant 0 : i32
    return %c0_i32, %c0_i32_0 : i32, i32
  }
  func.func @transform_3(%arg0: i32, %arg1: i32) -> (i32, i32) {
    %c0_i32 = arith.constant 0 : i32
    %c0_i32_0 = arith.constant 0 : i32
    %c0_i32_1 = arith.constant 0 : i32
    return %c0_i32, %c0_i32_0 : i32, i32
  }
  func.func @transform_4(%arg0: i32, %arg1: i32) -> (i32, i32) {
    %c0_i32 = arith.constant 0 : i32
    %c0_i32_0 = arith.constant 0 : i32
    %c0_i32_1 = arith.constant 0 : i32
    return %c0_i32, %c0_i32_0 : i32, i32
  }
  func.func @transform_5(%arg0: i32, %arg1: i32) -> (i32, i32, i32) {
    %c0_i32 = arith.constant 0 : i32
    %c0_i32_0 = arith.constant 0 : i32
    return %arg0, %arg1, %c0_i32 : i32, i32, i32
  }
  func.func @transform_6(%arg0: i32, %arg1: i32) -> (i32, i32, i32) {
    %c0_i32 = arith.constant 0 : i32
    %c0_i32_0 = arith.constant 0 : i32
    %c0_i32_1 = arith.constant 0 : i32
    return %arg0, %c0_i32, %c0_i32_0 : i32, i32, i32
  }
}

</mosaic_0001>

<bundles_post_ra>
// kernel: tpu_custom_call.1
= control target key start
LH: loop header
LB: loop body
LE: loop exit
PB: predicated region body
PF: predicated region fallthrough
CT: control target
= control target key end

     0   :  { %12 = vsyncpa [#allocation4], 0  ;;  %s1245_s0 = inlined_call_operand.vmem [shape: f32[2,8,32], index: 0, kind: input, shape index: {}]   ;;  %s1246_s1 = inlined_call_operand.vmem [shape: f32[2,8,32], index: 1, kind: input, shape index: {}]   ;;  %s1247_s2 = inlined_call_operand.vmem [shape: f32[32,16], index: 2, kind: input, shape index: {}]   ;;  %s1248_s3 = inlined_call_operand.vmem [shape: f32[32,16], index: 3, kind: input, shape index: {}]   ;;  %s1249_s4 = inlined_call_operand.vmem [shape: f32[32,16], index: 4, kind: input, shape index: {}]   ;;  %s1250_s5 = inlined_call_operand.hbm [shape: f32[2,8,8], index: 5, kind: output, shape index: {0}]   ;;  %s1251_s6 = inlined_call_operand.hbm [shape: f32[2,8,16], index: 6, kind: output, shape index: {1}]  }
   0x1   :  { %14 = vsyncpa [#allocation4 + $0x1], 0 }
   0x2   :  { %15 = vsyncpa [#allocation6], 0 }
   0x3   :  { %17 = vsyncpa [#allocation6 + $0x1], 0  ;;  %s1069_s21 = smov 0   ;;  %s1071_s22 = smov 0  }
   0x4   :  { %s1073_s23 = smov 0   ;;  %s1075_s24 = smov 0  }
   0x5   :  { %s1077_s25 = smov 0   ;;  %s1079_s26 = smov 0  }
   0x6 LB: > { %s781_s27 = sadd.s32 4294967295, %s1028_s26   ;;  %s782_s28 = sadd.s32 4294967294, %s1028_s26   ;;  %s1028_s26 = sphi %s1079_s26, %s23_s26   ;;  %s1024_s25 = sphi %s1077_s25, %s1262_s25   ;;  %s1020_s24 = sphi %s1075_s24, %s1261_s24   ;;  %s1016_s23 = sphi %s1073_s23, %s1260_s23   ;;  %s1012_s22 = sphi %s1071_s22, %s1259_s22   ;;  %s1008_s21 = sphi %s1069_s21, %s1258_s21  }
   0x7   : > { %s35_s29 = sadd.s32 1, %s1024_s25  ;;  %s161_s30 = sadd.s32 1, %s1016_s23 }
   0x8   : > { %p37_p0 = scmp.ge.s32.totalorder %s35_s29, 2  ;;  %p171_p1 = scmp.ne.s32.totalorder %s1016_s23, %s1012_s22 }
   0x9   : > { %p172_p2 = scmp.eq.s32.totalorder %s781_s27, 1  ;;  %p177_p3 = scmp.ne.s32.totalorder %s1012_s22, %s1008_s21 }
   0xa   : > { %s1264_s29 = smov (%p37_p0, %s35_s29), 0  ;;  %p178_p5 = scmp.eq.s32.totalorder %s782_s28, 1 }
   0xb   : > { %p1109_p4 = por %p172_p2, %p171_p1  ;;  %s156_s8 = ssub.s32 %s1024_s25, %s1264_s29 }
   0xc   : > { %p785_p6 = scmp.ge.s32.totalorder %s1028_s26, 1  ;;  %p159_p7 = scmp.eq.s32.totalorder %s156_s8, 0 }
   0xd   : > { %p1116_p8 = por %p178_p5, %p177_p3  ;;  %p248_p9 = scmp.lt.s32.totalorder %s1028_s26, 3 }
   0xe   : > { %s1122_s10 = scalar_select %p159_p7, %s1016_s23, %s161_s30  }
   0xf   : > { %p249_p10 = pnand %p785_p6, %p248_p9 }
  0x10   : > { %p289_p11 = scmp.lt.s32.totalorder (!%p249_p10), %s1020_s24, 1  ;;  %s1252_s19 = sshll.u32 (!%p249_p10), %s1020_s24, 7 }
  0x11   : > { %252 = sbr.rel (%p249_p10) target bundleno = 759 (0x2f7), region = 40  ;;  %s664_s28 = scalar_lea.hbm (!%p249_p10), %s1251_s6, %s1252_s19 }
  0x12   : > { %s1032_s11 = smov (!%p249_p10), [#allocation5]  }
  0x13   : > { %s926_s12 = sshll.u32 (!%p249_p10), %s1032_s11, 4  ;;  %s927_s12 = int_to_ptr.vmem [resolvable:$false] %s926_s12 }
  0x14   : > { %s928_s13 = scalar_lea.vmem (!%p249_p10), %s927_s12, 256 }
  0x16   : > { %v308_v0 = vld [vmem:[%s1248_s3 + $0x18] sm:$0xff]  ;;  %v1030_v1 = vmov 0.0   ;;  %v307_v2 = vld [vmem:[%s1248_s3 + $0x10] sm:$0xff]  ;;  %vm1031_vm0 = vmmov 0   ;;  %s290_s15 = scalar_select %p289_p11, %s1020_s24, 1  ;;  %v306_v3 = vld [vmem:[%s1248_s3 + $0x8] sm:$0xff] }
  0x17   : > { %818 = vmatprep.subr.mxu0 %v1030_v1  ;;  %826 = vmatprep.mubr.msk.f32.mxu0 %vm1031_vm0, %v1030_v1  ;;  %v305_v4 = vld [vmem:[%s1248_s3] sm:$0xff]  ;;  %vm309_vm1 = vcmask 261120   ;;  %v464_v6 = vld [vmem:[%s1247_s2 + $0x18] sm:$0xff]  ;;  %v463_v7 = vld [vmem:[%s1247_s2 + $0x10] sm:$0xff]  ;;  %vm383_vm2 = vcmask 130048   ;;  %vm617_vm3 = vcmask 64512  }
  0x18   : > { %819 = vmatpush3.msra.mxu0 %v308_v0  ;;  %829 = vmatprep.subr.mxu1 %v1030_v1  ;;  %s788_s18 = sshll.u32 %s290_s15, 3  ;;  %v462_v8 = vld [vmem:[%s1247_s2 + $0x8] sm:$0xff]  ;;  %v461_v9 = vld [vmem:[%s1247_s2] sm:$0xff]  ;;  %v388_v11 = vld [vmem:[%s1249_s4 + $0x18] sm:$0xff]  ;;  %s1176_s15 = sand.u32 1, %s1012_s22  }
  0x19   : > { %820 = vmatprep.subr.mxu0 %v1030_v1  ;;  %837 = vmatprep.mubr.msk.f32.mxu1 %vm1031_vm0, %v1030_v1  ;;  %s292_s30 = scalar_lea.vmem %s1245_s0, %s788_s18  ;;  %s299_s16 = scalar_lea.vmem %s1246_s1, %s788_s18  ;;  %v387_v12 = vld [vmem:[%s1249_s4 + $0x10] sm:$0xff]  ;;  %v386_v13 = vld [vmem:[%s1249_s4 + $0x8] sm:$0xff]  ;;  %v385_v14 = vld [vmem:[%s1249_s4] sm:$0xff] }
  0x1a   : > { %821 = vmatpush3.msra.mxu0 %v307_v2  ;;  %v304_v5 = vld [vmem:[%s292_s30] sm:$0xff]  ;;  %830 = vmatpush3.msra.mxu1 %v388_v11  ;;  %s639_s18 = scalar_lea.sflag [#allocation6], %s1176_s15 }
  0x1b   : > { %822 = vmatprep.subr.mxu0 %v1030_v1  ;;  %v460_v10 = vld [vmem:[%s299_s16] sm:$0xff]  ;;  %831 = vmatprep.subr.mxu1 %v1030_v1  ;;  %s1253_s16 = sshll.u32 %s1176_s15, 3 }
  0x1c   : > { %823 = vmatpush3.msra.mxu0 %v306_v3  ;;  %832 = vmatpush3.msra.mxu1 %v387_v12  ;;  %s288_s17 = scalar_lea.vmem [#allocation5], %s1253_s16 }
  0x1d   : > { %824 = vmatprep.subr.mxu0 %v1030_v1  ;;  %833 = vmatprep.subr.mxu1 %v1030_v1  ;;  %s666_s30 = sshll.u32 %s288_s17, 4  ;;  %s667_s30 = int_to_ptr.vmem [resolvable:$true] %s666_s30 }
  0x1e   : > { %825 = vmatpush3.msra.mxu0 %v305_v4  ;;  %834 = vmatpush3.msra.mxu1 %v386_v13  ;;  %s922_s8 = scalar_lea.vmem %s667_s30, 128  ;;  %p929_p1 = scmp.lt.s32.totalorder %s667_s30, %s927_s12 }
  0x1f   : > { %827 = vmatmul.mubr.msk.f32.vlgmr.msra.gmra.mxu0 %vm309_vm1, %v304_v5  ;;  %840 = vmatprep.subr.mxu0 %v1030_v1  ;;  %p923_p12 = scmp.ne.s32.totalorder %s667_s30, %s922_s8  ;;  %p930_p2 = scmp.lt.s32.totalorder %s928_s13, %s922_s8 }
  0x20   : > { %841 = vmatpush3.msra.mxu0 %v464_v6  ;;  %848 = vmatprep.mubr.msk.f32.mxu0 %vm1031_vm0, %v1030_v1 }
  0x21   : > { %842 = vmatprep.subr.mxu0 %v1030_v1  ;;  %835 = vmatprep.subr.mxu1 %v1030_v1  ;;  %p924_p13 = pnand %p923_p12, %p1109_p4  ;;  %p931_p3 = por %p930_p2, %p929_p1 }
  0x22   : > { %843 = vmatpush3.msra.mxu0 %v463_v7  ;;  %836 = vmatpush3.msra.mxu1 %v385_v14 }
  0x23   : > { %844 = vmatprep.subr.mxu0 %v1030_v1  ;;  %838 = vmatmul.mubr.msk.f32.vlgmr.msra.gmra.mxu1 %vm309_vm1, %v304_v5  ;;  %p925_p0 = pneg %p924_p13 }
  0x24   : > { %845 = vmatpush3.msra.mxu0 %v462_v8  ;;  %851 = vmatprep.subr.mxu1 %v1030_v1 }
  0x25   : > { %846 = vmatprep.subr.mxu0 %v1030_v1  ;;  %853 = vmatprep.mubr.msk.f32.mxu1 %vm1031_vm0, %v1030_v1  ;;  %p932_p5 = pnand %p931_p3, %p925_p0 }
  0x26   : > { %847 = vmatpush3.msra.mxu0 %v461_v9 }
  0x27   : > { %849 = vmatmul.mubr.msk.f32.vlgmr.msra.gmra.mxu0 %vm309_vm1, %v460_v10 }
  0xdf   : > { %v379_v15 = vpop.f32.mrf.mxu0 }
  0xe0   : > { %384 = vst.msk [vmem:[#allocation2] sm:$0xff] %vm383_vm2, %v379_v15 }
  0xe1   : > { %v828_v16 = vpop.f32.mrf.mxu0 }
  0xe3   : > { %v455_v20 = vpop.f32.mrf.mxu1 }
  0xe4   : > { %459 = vst.msk [vmem:[%s288_s17] sm:$0xff] %vm383_vm2, %v455_v20 }
  0xe5   : > { %v839_v21 = vpop.f32.mrf.mxu1 }
  0xe7   : > { %v539_v17 = vld [vmem:[#allocation2] sm:$0xff]  ;;  %v535_v18 = vpop.f32.mrf.mxu0 }
  0xe8   : > { %852 = vmatpush3.xpose.msk.msra.mxu1 %vm383_vm2, %v539_v17 }
  0xe9   : > { %v850_v19 = vpop.f32.mrf.mxu0 }
  0xeb   : > { %854 = vmatmul.mubr.msk.f32.vlgmr.msra.gmra.mxu1 %vm383_vm2, %v535_v18 }
 0x1ab   : > { %v613_v22 = vpop.f32.mrf.mxu1 }
 0x1ac   : > { %v618_v23 = vsel %vm617_vm3, %v613_v22, -inf }
 0x1ad   : > { %619 = vmax.xlane.f32.xlu0 %v618_v23  ;;  %v855_v24 = vpop.f32.mrf.mxu1 }
 0x236   : > { %v620_v25 = vpop.xlane.xlu0 %619 }
 0x237   : > { %v621_v26 = vsub.f32 %v613_v22, %v620_v25 }
 0x239   : > { %v622_v27 = vmul.f32 1.442695, %v621_v26 }
 0x23b   : > { %918 = vpow2.f32 %v622_v27 }
 0x248   : > { %v919_v28 = vpop.eup %918 }
 0x249   : > { %v624_v29 = vsel %vm617_vm3, %v919_v28, 0.0 }
 0x24a   : > { %625 = vadd.xlane.f32.xlu0 %v624_v29 }
 0x24b   : > { %935 = shalt.err (!%p932_p5)
}
 0x24c   : > { %s936_s14 = scalar_lea.hbm %s664_s28, 128  ;;  %s940_s27 = scalar_lea.hbm %s1251_s6, 256 }
 0x24d   : > { %p937_p6 = scmp.ne.s32.totalorder %s664_s28, %s936_s14  ;;  %p941_p10 = scmp.lt.s32.totalorder %s664_s28, %s1251_s6 }
 0x24e   : > { %p942_p11 = scmp.lt.s32.totalorder %s940_s27, %s936_s14 }
 0x24f   : > { %p938_p7 = pnand %p937_p6, %p1109_p4 }
 0x250   : > { %p943_p12 = por %p942_p11, %p941_p10 }
 0x251   : > { %p939_p9 = pneg %p938_p7 }
 0x253   : > { %p944_p13 = pnand %p943_p12, %p939_p9 }
 0x255   : > { %947 = shalt.err (!%p944_p13)
}
 0x256   : > { %857 = dma.vmem_to_hbm [thread:$0]  (%p1109_p4), %s667_s30, 128, %s664_s28, %s639_s18  }
 0x257   : > { %s1256_s8 = sshll.u32 %s1176_s15, 3  ;;  %s1257_s19 = sshll.u32 %s1020_s24, 7 }
 0x258   : > { %s281_s11 = scalar_lea.vmem [#allocation3], %s1256_s8  ;;  %s651_s14 = scalar_lea.hbm %s1250_s5, %s1257_s19 }
 0x259   : > { %s653_s16 = sshll.u32 %s281_s11, 4  ;;  %s634_s28 = scalar_lea.sflag [#allocation4], %s1176_s15  ;;  %s654_s16 = int_to_ptr.vmem [resolvable:$true] %s653_s16 }
 0x25a   : > { %s948_s30 = scalar_lea.vmem %s654_s16, 128  ;;  %s1033_s18 = smov [#allocation3]  }
 0x25b   : > { %p949_p0 = scmp.ne.s32.totalorder %s654_s16, %s948_s30  ;;  %s952_s17 = sshll.u32 %s1033_s18, 4  ;;  %s953_s17 = int_to_ptr.vmem [resolvable:$false] %s952_s17 }
 0x25c   : > { %s954_s20 = scalar_lea.vmem %s953_s17, 256  ;;  %p955_p3 = scmp.lt.s32.totalorder %s654_s16, %s953_s17 }
 0x25d   : > { %p950_p1 = pnand %p949_p0, %p1109_p4  ;;  %p956_p5 = scmp.lt.s32.totalorder %s954_s20, %s948_s30 }
 0x25f   : > { %p951_p2 = pneg %p950_p1  ;;  %p957_p6 = por %p956_p5, %p955_p3 }
 0x261   : > { %p958_p7 = pnand %p957_p6, %p951_p2 }
 0x2d3   : > { %v626_v30 = vpop.xlane.xlu0 %625 }
 0x2d4   : > { %920 = vrcp.f32 %v626_v30 }
 0x2e1   : > { %v921_v31 = vpop.eup %920 }
 0x2e2   : > { %v628_v32 = vmul.f32 %v921_v31, %v626_v30 }
 0x2e4   : > { %v629_v33 = vsub.f32 2.0, %v628_v32 }
 0x2e6   : > { %v630_v34 = vmul.f32 %v921_v31, %v629_v33 }
 0x2e8   : > { %v631_v35 = vmul.f32 %v919_v28, %v630_v34 }
 0x2ea   : > { %632 = vst.msk [vmem:[%s281_s11] sm:$0xff] %vm617_vm3, %v631_v35 }
 0x2eb   : > { %961 = shalt.err (!%p958_p7)
}
 0x2ec   : > { %s962_s24 = scalar_lea.hbm %s651_s14, 128  ;;  %s966_s8 = scalar_lea.hbm %s1250_s5, 256 }
 0x2ed   : > { %p963_p9 = scmp.ne.s32.totalorder %s651_s14, %s962_s24  ;;  %p967_p12 = scmp.lt.s32.totalorder %s651_s14, %s1250_s5 }
 0x2ee   : > { %p968_p13 = scmp.lt.s32.totalorder %s966_s8, %s962_s24 }
 0x2ef   : > { %p964_p10 = pnand %p963_p9, %p1109_p4 }
 0x2f0   : > { %p969_p0 = por %p968_p13, %p967_p12 }
 0x2f1   : > { %p965_p11 = pneg %p964_p10 }
 0x2f3   : > { %p970_p1 = pnand %p969_p0, %p965_p11 }
 0x2f5   : > { %973 = shalt.err (!%p970_p1)
}
 0x2f6   : > { %856 = dma.vmem_to_hbm [thread:$0]  (%p1109_p4), %s654_s16, 128, %s651_s14, %s634_s28  }
 0x2f7 PF: > { %p867_p2 = scmp.ge.s32.totalorder %s1028_s26, 2  ;;  %s678_s12 = sand.u32 1, %s1008_s21  }
 0x2f8   : > { %s679_s13 = scalar_lea.sflag [#allocation4], %s678_s12 }
 0x2f9   : > { %p861_p3 = pnand %p867_p2, %p1116_p8 }
 0x2fb   : > { %p862_p5 = pneg %p861_p3 }
 0x2fd   : > { %999 = dma.done.wait (%p862_p5), %s679_s13, 128  }
 0x2fe   : > { %1001 = vsyncadd (%p862_p5), %s679_s13, 4294967168  ;;  %s688_s30 = scalar_lea.sflag [#allocation6], %s678_s12 }
 0x2ff   : > { %1003 = dma.done.wait (%p862_p5), %s688_s30, 128  }
 0x300   : > { %1005 = vsyncadd (%p862_p5), %s688_s30, 4294967168  ;;  %s23_s26 = sadd.s32 1, %s1028_s26   ;;  %s1258_s21 = smov %s1012_s22 }
 0x301   : > { %p20_p6 = scmp.ge.s32.totalorder %s23_s26, 4   ;;  %s1259_s22 = smov %s1016_s23 }
 0x302   : > { %s1260_s23 = smov %s1122_s10  ;;  %s1261_s24 = smov %s1024_s25 }
 0x303   : > { %s1262_s25 = smov %s1264_s29  ;;  %22 = sbr.rel (!%p20_p6) target bundleno = 6 (0x6), region = 99 }
 0x308   :  { %693 = vsyncpa [#allocation4], 1 }
 0x309   :  { %695 = vsyncpa [#allocation4 + $0x1], 1 }
 0x30a   :  { %696 = vsyncpa [#allocation6], 1 }
 0x30b   :  { %698 = vsyncpa [#allocation6 + $0x1], 1 }

</bundles_post_ra>
